<compile_context>
chip_gen: v7x
topology: tpu7x:2x2x1
jax: 0.10.0
libtpu: 0.0.40
codegen_flags: <defaults>
</compile_context>

<pallas_src>
import math
import functools

import jax
import jax.numpy as jnp
from jax import lax
from jax.experimental import pallas as pl
from jax.experimental.pallas import tpu as pltpu

# Finite "-inf" used for masking: keeps exp()/max() NaN-free for rows that only become
# visible in later k-tiles; globally fully-masked rows still finish with l == 0 and
# acc == 0, so the final acc / l is 0/0 = NaN exactly like the PyTorch reference.
_MASK_VALUE = -1e30
_STATE_LANES = 128   # lane-replicated width for the m/l online-softmax scratch


# --------------------------------------------------------------------------------------
# Kernel 1: fused per-head QKV projection (x @ [Wq_h | Wk_h | Wv_h]), bf16 MXU, f32 accum.
# --------------------------------------------------------------------------------------
def _qkv_proj_kernel(x_ref, w_ref, q_ref, k_ref, v_ref, *, hd, w_resident):
    h = pl.program_id(2)
    x = x_ref[0]                                            # (tt, d_in) bf16
    w = w_ref[h] if w_resident else w_ref[0]                # (d_in, 3*hd) bf16
    qkv = jnp.dot(x, w, preferred_element_type=jnp.float32)  # one wide MXU matmul
    q_ref[0, 0] = qkv[:, :hd].astype(q_ref.dtype)           # Q already scaled via Wq
    k_ref[0, 0] = qkv[:, hd:2 * hd].astype(k_ref.dtype)
    v_ref[0, 0] = qkv[:, 2 * hd:].astype(v_ref.dtype)


# --------------------------------------------------------------------------------------
# Kernel 2: flash attention (online softmax over k-tiles) fused with output projection.
# --------------------------------------------------------------------------------------
def _flash_attn_proj_kernel(q_ref, k_ref, v_ref, wp_ref, bp_ref, out_ref,
                            m_s, l_s, acc_s, o_acc, *, tq, tk, wp_resident):
    qi = pl.program_id(1)
    h = pl.program_id(2)
    ki = pl.program_id(3)
    nh = pl.num_programs(2)
    nk = pl.num_programs(3)

    # Output accumulator (f32 VMEM) is resident across the (h, ki) reduction axes:
    # initialize once per (b, qi) with the projection bias.
    @pl.when((h == 0) & (ki == 0))
    def _init_out_acc():
        o_acc[...] = jnp.broadcast_to(bp_ref[...], o_acc.shape)

    # Per-head online-softmax state: reset at the first k-tile of every head.
    @pl.when(ki == 0)
    def _reset_state():
        m_s[...] = jnp.full_like(m_s, _MASK_VALUE)
        l_s[...] = jnp.zeros_like(l_s)
        acc_s[...] = jnp.zeros_like(acc_s)

    # Mask semantics (triu(diagonal=1) == True -> attend): key column c is visible to
    # query row r iff c > r.
    first_row = qi * tq
    first_col = ki * tk
    visible = first_col + (tk - 1) > first_row                 # some entry visible
    fully_visible = first_col > first_row + (tq - 1)           # every entry visible

    def _tile_update(masked):
        q = q_ref[0, 0]                                        # (tq, hd) bf16, pre-scaled
        k = k_ref[0, 0]                                        # (tk, hd) bf16
        v = v_ref[0, 0]                                        # (tk, hd) bf16
        # Contract over head_dim directly — no materialized k.T.
        s = lax.dot_general(q, k, (((1,), (1,)), ((), ())),
                            preferred_element_type=jnp.float32)          # (tq, tk) f32
        if masked:
            row = lax.broadcasted_iota(jnp.int32, (tq, tk), 0) + first_row
            col = lax.broadcasted_iota(jnp.int32, (tq, tk), 1) + first_col
            allow = col > row                                   # in-kernel mask, no HBM bias
            s = jnp.where(allow, s, _MASK_VALUE)

        m_prev = m_s[...]                                       # (tq, LANES) replicated
        s_max = jnp.max(s, axis=-1, keepdims=True)              # (tq, 1)
        m_new = jnp.maximum(m_prev, s_max)                      # (tq, LANES)
        alpha = jnp.exp(m_prev - m_new)                         # (tq, LANES)
        p = jnp.exp(s - m_new[:, :1])                           # (tq, tk)
        if masked:
            # Keep: zeroes masked entries (exp(0)=1 for rows still at _MASK_VALUE),
            # which is what preserves the NaN semantics of fully-masked rows.
            p = jnp.where(allow, p, 0.0)
        l_s[...] = alpha * l_s[...] + jnp.sum(p, axis=-1, keepdims=True)
        acc_s[...] = alpha[:, :1] * acc_s[...] + jnp.dot(
            p.astype(v.dtype), v, preferred_element_type=jnp.float32)
        m_s[...] = m_new

    # Fast path: interior tiles need no mask work at all (majority of tiles).
    @pl.when(fully_visible)
    def _full_tile():
        _tile_update(masked=False)

    # Boundary tiles (O(1) per q-row) keep the exact masked path.
    @pl.when(jnp.logical_and(visible, jnp.logical_not(fully_visible)))
    def _boundary_tile():
        _tile_update(masked=True)

    # After the last k-tile of a head: normalize and accumulate this head's slice of the
    # output projection (ctx @ Wproj == sum_h ctx_h @ Wproj_h) into the f32 accumulator.
    @pl.when(ki == nk - 1)
    def _finish_head():
        # Exact divide (not approx reciprocal) so fully-masked rows give 0/0 = NaN,
        # matching PyTorch's math-path SDPA with this strictly-upper-triangular mask.
        ctx = acc_s[...] / l_s[...][:, :1]                      # (tq, hd) f32
        wp = wp_ref[h] if wp_resident else wp_ref[0]            # (hd, d_out) bf16
        o_acc[...] += jnp.dot(ctx.astype(wp.dtype), wp,
                              preferred_element_type=jnp.float32)

    # Single lane-dense store to the output block, once per (b, qi).
    @pl.when((h == nh - 1) & (ki == nk - 1))
    def _store_out():
        out_ref[0] = o_acc[...].astype(out_ref.dtype)


# --------------------------------------------------------------------------------------
# Wrapper
# --------------------------------------------------------------------------------------
def _pick_tile(n, target):
    """Largest multiple of 8 that divides n and is <= target; n itself if none/small."""
    if n <= target:
        return n
    cand = (min(target, n) // 8) * 8
    while cand >= 8:
        if n % cand == 0:
            return cand
        cand -= 8
    return n


def _vmem_capacity_bytes():
    """Physical VMEM per core (128 MiB v5e/v6e, 64 MiB v7x); conservative fallback."""
    try:
        info = pltpu.get_tpu_info()
        cap = getattr(info, "vmem_capacity_bytes", None)
        if cap:
            return int(cap)
    except Exception:
        pass
    return 64 * 1024 * 1024


def mha_sdpa_pallas(x, w_qkv, w_proj, b_proj, *, num_heads, context_length,
                    q_tile=512, k_tile=1024, seq_tile=1024,
                    compute_dtype=jnp.bfloat16):
    """x: (B, T, d_in); w_qkv: (3*d_out, d_in); w_proj: (d_out, d_out); b_proj: (d_out,)."""
    B, T, d_in = x.shape
    d_out = w_qkv.shape[0] // 3
    H = num_heads
    hd = d_out // H
    assert d_out % H == 0, "d_out must be divisible by num_heads"
    if context_length < T:
        # The PyTorch module slices a (cl, cl) mask that cannot broadcast against the
        # (T, T) scores; SDPA raises in that case, so we require cl >= T up front.
        raise ValueError("context_length must be >= num_tokens")

    out_dtype = x.dtype
    out_isize = jnp.dtype(out_dtype).itemsize

    # Generation-aware VMEM budget: ~96 MiB on 128 MiB parts (v5e/v6e), ~48 MiB on v7x.
    vmem_cap = _vmem_capacity_bytes()
    vmem_limit = min(int(vmem_cap * 3 // 4), 112 * 1024 * 1024)
    budget = int(vmem_limit * 3 // 4)          # headroom for compiler temporaries

    # Weight residency decisions (fetch once vs per-head re-fetch).
    w_qkv_blk_bytes = 2 * (3 * d_out * d_in * 2)      # merged QKV weight, dbl-buffered bf16
    w_resident = w_qkv_blk_bytes <= vmem_limit // 4
    wp_full_bytes = 2 * (d_out * d_out * 2)            # full proj weight, dbl-buffered bf16
    wp_resident = wp_full_bytes <= vmem_limit // 4

    # ---- attention tile selection under the VMEM budget -----------------------------
    tq_t, tk_t = q_tile, k_tile
    while True:
        tq = _pick_tile(T, tq_t)
        tk = _pick_tile(T, tk_t)
        wp_blk = wp_full_bytes if wp_resident else 2 * (hd * d_out * 2)
        need = (2 * (tq * hd + 2 * tk * hd) * 2            # q/k/v blocks bf16, dbl-buffered
                + 2 * tq * d_out * out_isize                # output block, dbl-buffered
                + (2 * tq * _STATE_LANES + tq * hd + tq * d_out) * 4   # f32 scratch
                + 3 * tq * tk * 4                           # s/p temporaries (f32)
                + wp_blk)
        if need <= budget or (tq_t <= 128 and tk_t <= 256):
            break
        if tk_t > 256:
            tk_t //= 2
        elif tq_t > 128:
            tq_t //= 2
        else:
            break
    nq, nk = T // tq, T // tk

    # ---- QKV seq-tile selection ------------------------------------------------------
    tt_t = seq_tile
    while True:
        tt = _pick_tile(T, tt_t)
        w_blk = w_qkv_blk_bytes if w_resident else 2 * (d_in * 3 * hd * 2)
        need = 2 * tt * d_in * 2 + 3 * 2 * tt * hd * 2 + tt * 3 * hd * 4 + w_blk
        if need <= budget or tt_t <= 256:
            break
        tt_t //= 2
    nt = T // tt

    # bf16 MXU operands (f32 accumulation inside the kernels); softmax stays f32.
    x_c = x.astype(compute_dtype)
    scale = 1.0 / math.sqrt(hd)

    # nn.Linear weights are (out_features, in_features).  Pre-split per head, transpose
    # to (H, d_in, hd) and concatenate Q|K|V along the last axis so kernel 1 issues a
    # single wide matmul.  The SDPA 1/sqrt(head_dim) scale is folded into Wq.
    def _per_head(w):                                   # (d_out, d_in) -> (H, d_in, hd)
        return w.reshape(H, hd, d_in).transpose(0, 2, 1)

    w_cat = jnp.concatenate(
        [_per_head(w_qkv[:d_out] * scale),
         _per_head(w_qkv[d_out:2 * d_out]),
         _per_head(w_qkv[2 * d_out:])], axis=-1).astype(compute_dtype)   # (H, d_in, 3*hd)
    wp = w_proj.T.reshape(H, hd, d_out).astype(compute_dtype)            # (H, hd, d_out)
    bp = b_proj.reshape(1, d_out).astype(jnp.float32)

    # ---- Kernel 1: QKV projection into (B, H, T, hd) ---------------------------------
    if w_resident:
        w_spec = pl.BlockSpec((H, d_in, 3 * hd), lambda b, t, h: (0, 0, 0))
    else:
        w_spec = pl.BlockSpec((1, d_in, 3 * hd), lambda b, t, h: (h, 0, 0))

    qkv_cost = pl.CostEstimate(
        flops=2 * B * T * d_in * 3 * d_out,
        transcendentals=0,
        bytes_accessed=int(2 * B * T * d_in
                           + 2 * 3 * d_out * d_in * (1 if w_resident else B * nt)
                           + 3 * 2 * B * T * d_out))

    q, k, v = pl.pallas_call(
        functools.partial(_qkv_proj_kernel, hd=hd, w_resident=w_resident),
        out_shape=(jax.ShapeDtypeStruct((B, H, T, hd), compute_dtype),) * 3,
        grid=(B, nt, H),
        in_specs=[
            pl.BlockSpec((1, tt, d_in), lambda b, t, h: (b, t, 0)),
            w_spec,
        ],
        out_specs=(
            pl.BlockSpec((1, 1, tt, hd), lambda b, t, h: (b, h, t, 0)),
            pl.BlockSpec((1, 1, tt, hd), lambda b, t, h: (b, h, t, 0)),
            pl.BlockSpec((1, 1, tt, hd), lambda b, t, h: (b, h, t, 0)),
        ),
        compiler_params=pltpu.CompilerParams(
            dimension_semantics=("parallel", "parallel", "parallel"),
            vmem_limit_bytes=vmem_limit),
        cost_estimate=qkv_cost,
    )(x_c, w_cat)

    # ---- Kernel 2: flash attention + fused output projection -------------------------
    def _q_index(b, qi, h, ki):
        return (b, h, qi, 0)

    def _kv_index(b, qi, h, ki):
        # Clamp dead (fully-masked) k-tiles to the first visible tile for this q-tile:
        # dead grid steps then repeat the previous block index and cost no extra DMA.
        ki_eff = jnp.maximum(ki, (qi * tq + 1) // tk)
        return (b, h, ki_eff, 0)

    if wp_resident:
        wp_spec = pl.BlockSpec((H, hd, d_out), lambda b, qi, h, ki: (0, 0, 0))
    else:
        wp_spec = pl.BlockSpec((1, hd, d_out), lambda b, qi, h, ki: (h, 0, 0))

    kv_reads = max(1, (nq + 1) // 2)            # approx K/V re-streams after dead-tile clamp
    attn_cost = pl.CostEstimate(
        flops=int(4 * B * H * T * T * hd + 2 * B * T * d_out * d_out),
        transcendentals=int(B * H * T * T),
        bytes_accessed=int(2 * B * H * T * hd                       # Q
                           + 2 * 2 * B * H * T * hd * kv_reads      # K + V streamed
                           + 2 * d_out * d_out * (1 if wp_resident else B * nq)
                           + 4 * d_out
                           + B * T * d_out * out_isize))

    out = pl.pallas_call(
        functools.partial(_flash_attn_proj_kernel, tq=tq, tk=tk, wp_resident=wp_resident),
        out_shape=jax.ShapeDtypeStruct((B, T, d_out), out_dtype),
        grid=(B, nq, H, nk),
        in_specs=[
            pl.BlockSpec((1, 1, tq, hd), _q_index),
            pl.BlockSpec((1, 1, tk, hd), _kv_index),
            pl.BlockSpec((1, 1, tk, hd), _kv_index),
            wp_spec,
            pl.BlockSpec((1, d_out), lambda b, qi, h, ki: (0, 0)),
        ],
        out_specs=pl.BlockSpec((1, tq, d_out), lambda b, qi, h, ki: (b, qi, 0)),
        scratch_shapes=[
            pltpu.VMEM((tq, _STATE_LANES), jnp.float32),   # running row max (lane-replicated)
            pltpu.VMEM((tq, _STATE_LANES), jnp.float32),   # running denominator (replicated)
            pltpu.VMEM((tq, hd), jnp.float32),             # running numerator (ctx accum)
            pltpu.VMEM((tq, d_out), jnp.float32),          # f32 output-projection accumulator
        ],
        compiler_params=pltpu.CompilerParams(
            dimension_semantics=("parallel", "parallel", "arbitrary", "arbitrary"),
            vmem_limit_bytes=vmem_limit),
        cost_estimate=attn_cost,
    )(q, k, v, wp, bp)
    return out


# --------------------------------------------------------------------------------------
# Pure-JAX reference (mirrors the PyTorch forward) for a correctness check.
# --------------------------------------------------------------------------------------
def mha_sdpa_reference(x, w_qkv, w_proj, b_proj, *, num_heads, context_length):
    B, T, _ = x.shape
    d_out = w_qkv.shape[0] // 3
    hd = d_out // num_heads

    qkv = x @ w_qkv.T                                                 # (B, T, 3*d_out)
    qkv = qkv.reshape(B, T, 3, num_heads, hd).transpose(2, 0, 3, 1, 4)
    q, k, v = qkv[0], qkv[1], qkv[2]                                  # (B, H, T, hd)

    mask_bool = jnp.triu(jnp.ones((T, T), dtype=jnp.float32), k=1).astype(bool)
    bias = jnp.where(mask_bool, 0.0, -jnp.inf)                        # True -> attend

    s = jnp.einsum('bhqd,bhkd->bhqk', q, k) / math.sqrt(hd) + bias
    p = jax.nn.softmax(s, axis=-1)
    ctx = jnp.einsum('bhqk,bhkd->bhqd', p, v)
    ctx = ctx.transpose(0, 2, 1, 3).reshape(B, T, d_out)
    return ctx @ w_proj.T + b_proj


if __name__ == "__main__":
    # Small, module-consistent shapes: batch=2, seq=8, d_in=d_out=32, 4 heads (hd=8).
    B, T = 2, 8
    d_in = d_out = 32
    num_heads = 4
    context_length = 8

    key = jax.random.PRNGKey(0)
    kx, kqkv, kproj, kbias = jax.random.split(key, 4)

    x = jax.random.normal(kx, (B, T, d_in), dtype=jnp.float32)
    w_qkv = 0.05 * jax.random.normal(kqkv, (3 * d_out, d_in), dtype=jnp.float32)
    w_proj = 0.05 * jax.random.normal(kproj, (d_out, d_out), dtype=jnp.float32)
    b_proj = 0.01 * jax.random.normal(kbias, (d_out,), dtype=jnp.float32)

    out = mha_sdpa_pallas(x, w_qkv, w_proj, b_proj,
                          num_heads=num_heads, context_length=context_length)
    out = jax.block_until_ready(out)

    ref = mha_sdpa_reference(x, w_qkv, w_proj, b_proj,
                             num_heads=num_heads, context_length=context_length)
    # The last query row is fully masked by the module's strictly-upper-triangular
    # boolean attn_mask and is NaN in both implementations, hence equal_nan=True.
    assert out.shape == (B, T, d_out)
    assert bool(jnp.allclose(out, ref, atol=2e-2, rtol=2e-2, equal_nan=True)), \
        "Pallas output does not match JAX reference"

    print("KERNEL_OK")
</pallas_src>

<mosaic_0001>
module attributes {stable_mosaic.version = 11 : i64} {
  func.func @_qkv_proj_kernel(%arg0: i32, %arg1: i32, %arg2: i32, %arg3: memref<1x8x32xbf16, #tpu.memory_space<vmem>>, %arg4: memref<4x32x24xbf16, #tpu.memory_space<vmem>>, %arg5: memref<1x1x8x8xbf16, #tpu.memory_space<vmem>>, %arg6: memref<1x1x8x8xbf16, #tpu.memory_space<vmem>>, %arg7: memref<1x1x8x8xbf16, #tpu.memory_space<vmem>>) attributes {dimension_semantics = [#tpu.dimension_semantics<parallel>, #tpu.dimension_semantics<parallel>, #tpu.dimension_semantics<parallel>], iteration_bounds = array<i64: 2, 1, 4>, scalar_prefetch = 0 : i64, scratch_operands = 0 : i64, tpu.core_type = #tpu.core_type<tc>, window_params = [{transform_indices = @transform_0, window_bounds = array<i64: 1, 8, 32>}, {pipeline_mode = #tpu.pipeline_mode<synchronous>, transform_indices = @transform_1, window_bounds = array<i64: 4, 32, 24>}, {transform_indices = @transform_2, window_bounds = array<i64: 1, 1, 8, 8>}, {transform_indices = @transform_3, window_bounds = array<i64: 1, 1, 8, 8>}, {transform_indices = @transform_4, window_bounds = array<i64: 1, 1, 8, 8>}]} {
    %c0 = arith.constant 0 : index
    %c0_0 = arith.constant 0 : index
    %c0_1 = arith.constant 0 : index
    %0 = vector.load %arg3[%c0, %c0_0, %c0_1] : memref<1x8x32xbf16, #tpu.memory_space<vmem>>, vector<1x8x32xbf16>
    %1 = vector.shape_cast %0 : vector<1x8x32xbf16> to vector<8x32xbf16>
    %2 = arith.index_cast %arg2 : i32 to index
    %c0_2 = arith.constant 0 : index
    %c0_3 = arith.constant 0 : index
    %3 = vector.load %arg4[%2, %c0_2, %c0_3] : memref<4x32x24xbf16, #tpu.memory_space<vmem>>, vector<1x32x24xbf16>
    %4 = vector.shape_cast %3 : vector<1x32x24xbf16> to vector<32x24xbf16>
    %cst = arith.constant dense<0.000000e+00> : vector<8x24xf32>
    %5 = tpu.matmul %1, %4, %cst {dimension_numbers = #tpu.dot_dimension_numbers<[1], [0], [0], [1], [0, 0, 1, 1], [], []>} : vector<8x32xbf16>, vector<32x24xbf16>, vector<8x24xf32> -> vector<8x24xf32>
    %6 = vector.extract_strided_slice %5 {offsets = [0, 0], sizes = [8, 8], strides = [1, 1]} : vector<8x24xf32> to vector<8x8xf32>
    %7 = arith.truncf %6 : vector<8x8xf32> to vector<8x8xbf16>
    %c0_4 = arith.constant 0 : index
    %c0_5 = arith.constant 0 : index
    %c0_6 = arith.constant 0 : index
    %c0_7 = arith.constant 0 : index
    %8 = vector.load %arg5[%c0_4, %c0_5, %c0_6, %c0_7] : memref<1x1x8x8xbf16, #tpu.memory_space<vmem>>, vector<1x1x8x8xbf16>
    %9 = vector.shape_cast %8 : vector<1x1x8x8xbf16> to vector<8x8xbf16>
    %10 = vector.shape_cast %7 : vector<8x8xbf16> to vector<1x1x8x8xbf16>
    tpu.vector_store %arg5[%c0_4, %c0_5, %c0_6, %c0_7], %10 {strides = array<i32>} : memref<1x1x8x8xbf16, #tpu.memory_space<vmem>>, vector<1x1x8x8xbf16>,
    %11 = vector.extract_strided_slice %5 {offsets = [0, 8], sizes = [8, 8], strides = [1, 1]} : vector<8x24xf32> to vector<8x8xf32>
    %12 = arith.truncf %11 : vector<8x8xf32> to vector<8x8xbf16>
    %c0_8 = arith.constant 0 : index
    %c0_9 = arith.constant 0 : index
    %c0_10 = arith.constant 0 : index
    %c0_11 = arith.constant 0 : index
    %13 = vector.load %arg6[%c0_8, %c0_9, %c0_10, %c0_11] : memref<1x1x8x8xbf16, #tpu.memory_space<vmem>>, vector<1x1x8x8xbf16>
    %14 = vector.shape_cast %13 : vector<1x1x8x8xbf16> to vector<8x8xbf16>
    %15 = vector.shape_cast %12 : vector<8x8xbf16> to vector<1x1x8x8xbf16>
    tpu.vector_store %arg6[%c0_8, %c0_9, %c0_10, %c0_11], %15 {strides = array<i32>} : memref<1x1x8x8xbf16, #tpu.memory_space<vmem>>, vector<1x1x8x8xbf16>,
    %16 = vector.extract_strided_slice %5 {offsets = [0, 16], sizes = [8, 8], strides = [1, 1]} : vector<8x24xf32> to vector<8x8xf32>
    %17 = arith.truncf %16 : vector<8x8xf32> to vector<8x8xbf16>
    %c0_12 = arith.constant 0 : index
    %c0_13 = arith.constant 0 : index
    %c0_14 = arith.constant 0 : index
    %c0_15 = arith.constant 0 : index
    %18 = vector.load %arg7[%c0_12, %c0_13, %c0_14, %c0_15] : memref<1x1x8x8xbf16, #tpu.memory_space<vmem>>, vector<1x1x8x8xbf16>
    %19 = vector.shape_cast %18 : vector<1x1x8x8xbf16> to vector<8x8xbf16>
    %20 = vector.shape_cast %17 : vector<8x8xbf16> to vector<1x1x8x8xbf16>
    tpu.vector_store %arg7[%c0_12, %c0_13, %c0_14, %c0_15], %20 {strides = array<i32>} : memref<1x1x8x8xbf16, #tpu.memory_space<vmem>>, vector<1x1x8x8xbf16>,
    return
  }
  func.func @transform_0(%arg0: i32, %arg1: i32, %arg2: i32) -> (i32, i32, i32) {
    %c0_i32 = arith.constant 0 : i32
    %c0_i32_0 = arith.constant 0 : i32
    return %arg0, %arg1, %c0_i32 : i32, i32, i32
  }
  func.func @transform_1(%arg0: i32, %arg1: i32, %arg2: i32) -> (i32, i32, i32) {
    %c0_i32 = arith.constant 0 : i32
    %c0_i32_0 = arith.constant 0 : i32
    %c0_i32_1 = arith.constant 0 : i32
    %c0_i32_2 = arith.constant 0 : i32
    return %c0_i32, %c0_i32_0, %c0_i32_1 : i32, i32, i32
  }
  func.func @transform_2(%arg0: i32, %arg1: i32, %arg2: i32) -> (i32, i32, i32, i32) {
    %c0_i32 = arith.constant 0 : i32
    %c0_i32_0 = arith.constant 0 : i32
    return %arg0, %arg2, %arg1, %c0_i32 : i32, i32, i32, i32
  }
  func.func @transform_3(%arg0: i32, %arg1: i32, %arg2: i32) -> (i32, i32, i32, i32) {
    %c0_i32 = arith.constant 0 : i32
    %c0_i32_0 = arith.constant 0 : i32
    return %arg0, %arg2, %arg1, %c0_i32 : i32, i32, i32, i32
  }
  func.func @transform_4(%arg0: i32, %arg1: i32, %arg2: i32) -> (i32, i32, i32, i32) {
    %c0_i32 = arith.constant 0 : i32
    %c0_i32_0 = arith.constant 0 : i32
    return %arg0, %arg2, %arg1, %c0_i32 : i32, i32, i32, i32
  }
}

</mosaic_0001>

<bundles_post_ra>
// kernel: tpu_custom_call.1
= control target key start
LH: loop header
LB: loop body
LE: loop exit
PB: predicated region body
PF: predicated region fallthrough
CT: control target
= control target key end

     0   :  { %10 = vsyncpa [#allocation3], 0  ;;  %s1083_s0 = inlined_call_operand.vmem [shape: bf16[2,8,32], index: 0, kind: input, shape index: {}]   ;;  %s1084_s1 = inlined_call_operand.vmem [shape: bf16[4,32,24], index: 1, kind: input, shape index: {}]   ;;  %s1085_s2 = inlined_call_operand.hbm [shape: bf16[2,4,8,8], index: 2, kind: output, shape index: {0}]   ;;  %s1086_s3 = inlined_call_operand.hbm [shape: bf16[2,4,8,8], index: 3, kind: output, shape index: {1}]   ;;  %s1087_s4 = inlined_call_operand.hbm [shape: bf16[2,4,8,8], index: 4, kind: output, shape index: {2}]  }
   0x1   :  { %12 = vsyncpa [#allocation3 + $0x1], 0 }
   0x2   :  { %13 = vsyncpa [#allocation5], 0 }
   0x3   :  { %15 = vsyncpa [#allocation5 + $0x1], 0  ;;  %s853_s15 = smov 0   ;;  %s855_s16 = smov 0  }
   0x4   :  { %s857_s17 = smov 0   ;;  %s859_s18 = smov 0  }
   0x5   :  { %s861_s19 = smov 0   ;;  %s863_s20 = smov 0  }
   0x6   :  { %s865_s21 = smov 0   ;;  %s867_s22 = smov 0  }
   0x7 LB: > { %s539_s23 = sadd.s32 4294967295, %s819_s22   ;;  %s1088_s24 = sadd.s32 4294967294, %s819_s22   ;;  %s819_s22 = sphi %s867_s22, %s21_s22   ;;  %s815_s21 = sphi %s865_s21, %s1100_s21   ;;  %s811_s20 = sphi %s863_s20, %s1099_s20   ;;  %s807_s19 = sphi %s861_s19, %s1098_s19   ;;  %s803_s18 = sphi %s859_s18, %s1097_s18   ;;  %s799_s17 = sphi %s857_s17, %s1096_s17   ;;  %s795_s16 = sphi %s855_s16, %s1095_s16   ;;  %s791_s15 = sphi %s853_s15, %s1094_s15  }
   0x8   : > { %s33_s25 = sadd.s32 1, %s811_s20  ;;  %s40_s26 = sadd.s32 1, %s815_s21 }
   0x9   : > { %p34_p0 = scmp.ge.s32.totalorder %s33_s25, 4  ;;  %p110_p1 = scmp.ne.s32.totalorder %s799_s17, %s795_s16 }
   0xa   : > { %p111_p2 = scmp.eq.s32.totalorder %s539_s23, 7  ;;  %p116_p5 = scmp.ne.s32.totalorder %s795_s16, %s791_s15 }
   0xb   : > { %s1102_s25 = smov (%p34_p0, %s33_s25), 0  ;;  %s1104_s26 = smov (!%p34_p0, %s40_s26), %s815_s21 }
   0xc   : > { %s94_s27 = ssub.s32 %s811_s20, %s1102_s25  ;;  %p906_p3 = por %p111_p2, %p110_p1 }
   0xd   : > { %p42_p4 = scmp.ge.s32.totalorder %s1104_s26, 2  ;;  %p117_p6 = scmp.eq.s32.totalorder %s1088_s24, 7 }
   0xe   : > { %p543_p7 = scmp.ge.s32.totalorder %s819_s22, 1  ;;  %p208_p9 = scmp.lt.s32.totalorder %s819_s22, 9 }
   0xf   : > { %s1106_s26 = smov (%p42_p4, %s1104_s26), 0  ;;  %p917_p8 = por %p117_p6, %p116_p5 }
  0x10   : > { %s93_s30 = ssub.s32 %s815_s21, %s1106_s26  ;;  %s100_s5 = sadd.s32 1, %s799_s17 }
  0x11   : > { %s95_s6 = sor.u32 %s94_s27, %s93_s30  ;;  %p209_p10 = pnand %p543_p7, %p208_p9 }
  0x12   : > { %p98_p11 = scmp.eq.s32.totalorder %s95_s6, 0  ;;  %s565_s8 = sshll.u32 (!%p209_p10), %s803_s18, 4  ;;  %v821_v0 = vmov (!%p209_p10), 0.0   ;;  %vm822_vm0 = vmmov (!%p209_p10), 0   ;;  %vm274_vm1 = vcmask (!%p209_p10), 261120   ;;  %vm319_vm2 = vcmask (!%p209_p10), 60416  }
  0x13   : > { %212 = sbr.rel (%p209_p10) target bundleno = 397 (0x18d), region = 28  ;;  %p246_p12 = scmp.lt.s32.totalorder (!%p209_p10), %s807_s19, 1  ;;  %570 = vmatprep.subr.bf16.mxu0 (!%p209_p10), %v821_v0  ;;  %574 = vmatprep.mubr.msk.bf16.mxu0 (!%p209_p10), %vm822_vm0, %v821_v0 }
  0x14   : > { %s926_s7 = scalar_select %p98_p11, %s799_s17, %s100_s5  }
  0x15   : > { %s257_s11 = scalar_lea.vmem (!%p209_p10), %s1084_s1, %s565_s8  ;;  %s229_s5 = sand.u32 (!%p209_p10), 1, %s795_s16  }
  0x16   : > { %v663_v1 = vld [vmem:[%s257_s11] sm:$0xff] (!%p209_p10)   ;;  %v664_v2 = vld [vmem:[%s257_s11 + $0x8] sm:$0xff] (!%p209_p10)   ;;  %s557_s6 = sshll.u32 (!%p209_p10), %s807_s19, 2  ;;  %s939_s8 = sshll.u32 (!%p209_p10), %s229_s5, 2 }
  0x17   : > { %571 = vmatpush3.bf16.msra.mxu0 (!%p209_p10), %v663_v1  ;;  %s355_s9 = sadd.s32 (!%p209_p10), %s803_s18, %s557_s6  ;;  %s231_s11 = scalar_lea.vmem (!%p209_p10), [#allocation2], %s939_s8 }
  0x18   : > { %572 = vmatprep.subr.bf16.mxu0 (!%p209_p10), %v821_v0  ;;  %s942_s10 = sshll.u32 (!%p209_p10), %s355_s9, 6  ;;  %s823_s18 = smov (!%p209_p10), 120  }
  0x19   : > { %s949_s27 = scalar_lea.hbm (!%p209_p10), %s1085_s2, %s942_s10  ;;  %s824_s6 = smov (!%p209_p10), [#allocation2]  }
  0x1a   : > { %s247_s12 = scalar_select %p246_p12, %s807_s19, 1 }
  0x1b   : > { %573 = vmatpush3.bf16.msra.mxu0 %v664_v2  ;;  %s333_s19 = scalar_lea.sflag [#allocation3], %s229_s5  ;;  %s669_s9 = sshll.u32 %s824_s6, 4  ;;  %s670_s9 = int_to_ptr.vmem [resolvable:$false] %s669_s9 }
  0x1c   : > { %s547_s13 = sshll.u32 %s247_s12, 2  ;;  %s359_s12 = sshll.u32 %s231_s11, 4  ;;  %s951_s12 = int_to_ptr.vmem [resolvable:$true] %s359_s12 }
  0x1d   : > { %s252_s30 = scalar_lea.vmem %s1083_s0, %s547_s13  ;;  %s671_s13 = scalar_lea.vmem %s670_s9, 128 }
  0x1e   : > { %v254_v3 = vld [vmem:[%s252_s30] sm:$0xf]  ;;  %s665_s30 = scalar_lea.vmem %s951_s12, 64  ;;  %p672_p2 = scmp.lt.s32.totalorder %s951_s12, %s670_s9 }
  0x1f   : > { %575 = vmatmul.mubr.msk.bf16.vlgmr.msra.gmra.mrb[0].mxu0 %vm274_vm1, %v254_v3  ;;  %p666_p13 = scmp.ne.s32.totalorder %s951_s12, %s665_s30  ;;  %p673_p4 = scmp.lt.s32.totalorder %s671_s13, %s665_s30 }
  0x21   : > { %p667_p0 = pnand %p666_p13, %p906_p3  ;;  %p674_p5 = por %p673_p4, %p672_p2 }
  0x23   : > { %p668_p1 = pneg %p667_p0 }
  0x25   : > { %p675_p6 = pnand %p674_p5, %p668_p1 }
  0xf2   : > { %v312_v4 = vpop.f32.mrb[0].mxu0 }
  0xf3   : > { %v318_v5 = vpack.c.bf16 %v312_v4, %v312_v4  ;;  %v576_v6 = vpop.f32.mrb[1].mxu0 }
  0xf4   : > { %v315_v7 = vpop.f32.mrb[2].mxu0 }
  0xf5   : > { %324 = vrot.lane.b32.xlu0 %v318_v5, %s823_s18  ;;  %v577_v8 = vpop.f32.mrb[3].mxu0  ;;  %320 = vst.msk [vmem:[%s231_s11] sm:$0xf] %vm319_vm2, %v318_v5 }
  0xf6   : > { %678 = shalt.err (!%p675_p6)
}
  0xf7   : > { %s679_s5 = scalar_lea.hbm %s949_s27, 64  ;;  %s683_s18 = scalar_lea.hbm %s1085_s2, 512 }
  0xf8   : > { %p680_p7 = scmp.ne.s32.totalorder %s949_s27, %s679_s5  ;;  %p684_p11 = scmp.lt.u32.totalorder %s949_s27, %s1085_s2 }
  0xf9   : > { %p685_p12 = scmp.lt.u32.totalorder %s683_s18, %s679_s5  ;;  %p687_p0 = scmp.lt.u32.totalorder %s679_s5, %s949_s27 }
  0xfa   : > { %p681_p9 = pnand %p680_p7, %p906_p3 }
  0xfb   : > { %p686_p13 = por %p685_p12, %p684_p11 }
  0xfc   : > { %p682_p10 = pneg %p681_p9 }
  0xfd   : > { %p688_p1 = por %p687_p0, %p686_p13 }
  0xff   : > { %p689_p2 = pnand %p688_p1, %p682_p10 }
 0x101   : > { %692 = shalt.err (!%p689_p2)
}
 0x102   : > { %578 = dma.vmem_to_hbm [thread:$0]  (%p906_p3), %s951_s12, 64, %s949_s27, %s333_s19  }
 0x103   : > { %s825_s30 = smov 112   ;;  %s977_s13 = sand.u32 1, %s539_s23  }
 0x104   : > { %328 = vrot.lane.b32.xlu0 %v318_v5, %s825_s30  ;;  %s238_s5 = scalar_lea.vmem [#allocation4], %s939_s8  ;;  %s984_s6 = scalar_lea.hbm %s1086_s3, %s942_s10 }
 0x105   : > { %s375_s11 = sshll.u32 %s238_s5, 4  ;;  %s1089_s12 = scalar_lea.vmem [#allocation6], %s939_s8  ;;  %s986_s11 = int_to_ptr.vmem [resolvable:$true] %s375_s11 }
 0x106   : > { %s991_s27 = sshll.u32 %s1089_s12, 4  ;;  %s338_s23 = scalar_lea.sflag [#allocation5], %s977_s13  ;;  %s1019_s27 = int_to_ptr.vmem [resolvable:$true] %s991_s27 }
 0x107   : > { %s693_s19 = scalar_lea.vmem %s986_s11, 64  ;;  %s826_s9 = smov [#allocation4]  }
 0x108   : > { %p694_p4 = scmp.ne.s32.totalorder %s986_s11, %s693_s19  ;;  %s697_s30 = sshll.u32 %s826_s9, 4  ;;  %s698_s30 = int_to_ptr.vmem [resolvable:$false] %s697_s30 }
 0x109   : > { %s699_s14 = scalar_lea.vmem %s698_s30, 128  ;;  %p700_p7 = scmp.lt.s32.totalorder %s986_s11, %s698_s30 }
 0x10a   : > { %p695_p5 = pnand %p694_p4, %p906_p3  ;;  %p701_p9 = scmp.lt.s32.totalorder %s699_s14, %s693_s19 }
 0x10c   : > { %p696_p6 = pneg %p695_p5  ;;  %p702_p10 = por %p701_p9, %p700_p7 }
 0x10e   : > { %p703_p11 = pnand %p702_p10, %p696_p6 }
 0x167   : > { %v325_v9 = vpop.permute.xlu0 %324 }
 0x168   : > { %327 = vst.msk [vmem:[%s238_s5] sm:$0xf] %vm319_vm2, %v325_v9 }
 0x169   : > { %706 = shalt.err (!%p703_p11)
}
 0x16a   : > { %s707_s5 = scalar_lea.hbm %s984_s6, 64  ;;  %s711_s9 = scalar_lea.hbm %s1086_s3, 512 }
 0x16b   : > { %p708_p12 = scmp.ne.s32.totalorder %s984_s6, %s707_s5  ;;  %p712_p1 = scmp.lt.u32.totalorder %s984_s6, %s1086_s3 }
 0x16c   : > { %p713_p2 = scmp.lt.u32.totalorder %s711_s9, %s707_s5  ;;  %p715_p5 = scmp.lt.u32.totalorder %s707_s5, %s984_s6 }
 0x16d   : > { %p709_p13 = pnand %p708_p12, %p906_p3 }
 0x16e   : > { %p714_p4 = por %p713_p2, %p712_p1 }
 0x16f   : > { %p710_p0 = pneg %p709_p13 }
 0x170   : > { %p716_p6 = por %p715_p5, %p714_p4 }
 0x172   : > { %p717_p7 = pnand %p716_p6, %p710_p0 }
 0x174   : > { %720 = shalt.err (!%p717_p7)
}
 0x175   : > { %579 = dma.vmem_to_hbm [thread:$0]  (%p906_p3), %s986_s11, 64, %s984_s6, %s338_s23  }
 0x176   : > { %s1025_s19 = scalar_lea.hbm %s1087_s4, %s942_s10  ;;  %v329_v10 = vpop.permute.xlu0 %328  ;;  %s1092_s14 = scalar_lea.vmem [#allocation6], %s939_s8 }
 0x177   : > { %331 = vst.msk [vmem:[%s1092_s14] sm:$0xf] %vm319_vm2, %v329_v10  ;;  %s721_s5 = scalar_lea.vmem %s1019_s27, 64  ;;  %s827_s11 = smov [#allocation6]  }
 0x178   : > { %p722_p9 = scmp.ne.s32.totalorder %s1019_s27, %s721_s5  ;;  %s725_s6 = sshll.u32 %s827_s11, 4  ;;  %s726_s6 = int_to_ptr.vmem [resolvable:$false] %s725_s6 }
 0x179   : > { %s727_s18 = scalar_lea.vmem %s726_s6, 128  ;;  %p728_p12 = scmp.lt.s32.totalorder %s1019_s27, %s726_s6 }
 0x17a   : > { %p723_p10 = pnand %p722_p9, %p906_p3  ;;  %p729_p13 = scmp.lt.s32.totalorder %s727_s18, %s721_s5 }
 0x17c   : > { %p724_p11 = pneg %p723_p10  ;;  %p730_p0 = por %p729_p13, %p728_p12 }
 0x17e   : > { %p731_p1 = pnand %p730_p0, %p724_p11 }
 0x180   : > { %734 = shalt.err (!%p731_p1)
}
 0x181   : > { %s735_s8 = scalar_lea.hbm %s1025_s19, 64  ;;  %s739_s30 = scalar_lea.hbm %s1087_s4, 512 }
 0x182   : > { %p736_p2 = scmp.ne.s32.totalorder %s1025_s19, %s735_s8  ;;  %p740_p6 = scmp.lt.u32.totalorder %s1025_s19, %s1087_s4 }
 0x183   : > { %p741_p7 = scmp.lt.u32.totalorder %s739_s30, %s735_s8  ;;  %p743_p10 = scmp.lt.u32.totalorder %s735_s8, %s1025_s19 }
 0x184   : > { %p737_p4 = pnand %p736_p2, %p906_p3 }
 0x185   : > { %p742_p9 = por %p741_p7, %p740_p6 }
 0x186   : > { %p738_p5 = pneg %p737_p4 }
 0x187   : > { %p744_p11 = por %p743_p10, %p742_p9 }
 0x189   : > { %p745_p12 = pnand %p744_p11, %p738_p5 }
 0x18b   : > { %748 = shalt.err (!%p745_p12)
}
 0x18c   : > { %580 = dma.vmem_to_hbm [thread:$0]  (%p906_p3), %s1019_s27, 64, %s1025_s19, %s338_s23  }
 0x18d PF: > { %p594_p13 = scmp.ge.s32.totalorder %s819_s22, 2  ;;  %s403_s14 = sand.u32 1, %s791_s15  }
 0x18e   : > { %s404_s5 = scalar_lea.sflag [#allocation3], %s403_s14 }
 0x18f   : > { %p585_p0 = pnand %p594_p13, %p917_p8 }
 0x191   : > { %782 = dma.done.wait (!%p585_p0), %s404_s5, 64  }
 0x192   : > { %784 = vsyncadd (!%p585_p0), %s404_s5, 4294967232  ;;  %s1093_s11 = sadd.s32 4294967294, %s819_s22  }
 0x193   : > { %s412_s6 = sand.u32 1, %s1093_s11  }
 0x194   : > { %s413_s28 = scalar_lea.sflag [#allocation5], %s412_s6 }
 0x195   : > { %786 = dma.done.wait (!%p585_p0), %s413_s28, 128  }
 0x196   : > { %788 = vsyncadd (!%p585_p0), %s413_s28, 4294967168  ;;  %s21_s22 = sadd.s32 1, %s819_s22   ;;  %s1094_s15 = smov %s795_s16 }
 0x197   : > { %p18_p3 = scmp.ge.s32.totalorder %s21_s22, 10   ;;  %s1095_s16 = smov %s799_s17 }
 0x198   : > { %s1096_s17 = smov %s926_s7  ;;  %s1097_s18 = smov %s811_s20 }
 0x199   : > { %s1098_s19 = smov %s815_s21  ;;  %s1099_s20 = smov %s1102_s25 }
 0x19a   : > { %s1100_s21 = smov %s1106_s26  ;;  %20 = sbr.rel (!%p18_p3) target bundleno = 7 (0x7), region = 96 }
 0x1a1   :  { %427 = vsyncpa [#allocation3], 1 }
 0x1a2   :  { %429 = vsyncpa [#allocation3 + $0x1], 1 }
 0x1a3   :  { %430 = vsyncpa [#allocation5], 1 }
 0x1a4   :  { %432 = vsyncpa [#allocation5 + $0x1], 1 }

</bundles_post_ra>
